<compile_context>
chip_gen: v7x
topology: tpu7x:2x2x1
jax: 0.10.0
libtpu: 0.0.40
codegen_flags: <defaults>
</compile_context>

<pallas_src>
import functools

import jax
import jax.numpy as jnp
import numpy as np
from jax import lax
from jax.experimental import pallas as pl
from jax.experimental.pallas import tpu as pltpu

_NEG_LARGE = -1e30  # finite stand-in for -inf (robust to fully-masked rows)


def _round_up(x, m):
    return ((x + m - 1) // m) * m


def _cdiv(a, b):
    return -(-a // b)


def _pad_to(x, shape):
    pads = [(0, t - s) for s, t in zip(x.shape, shape)]
    if all(p == (0, 0) for p in pads):
        return x
    return jnp.pad(x, pads)


def _vmem_capacity_bytes():
    """Per-core VMEM capacity; conservative fallback if the query fails."""
    try:
        info = pltpu.get_tpu_info()
        for name in ("vmem_capacity_bytes", "vmem_size_bytes", "vmem_bytes"):
            cap = getattr(info, name, None)
            if cap:
                return int(cap)
    except Exception:
        pass
    return 64 * 1024 * 1024  # v7x has the smallest per-TC VMEM


def _additive_attention_kernel(wq_ref, v_ref, m_ref, wvt_ref, wc_ref,
                               ctx_ref, att_ref, *, s_chunk, elem_dtype):
    """One grid step: TB batch rows; padded S and H fully resident in VMEM."""
    TB, Sp, Hp = v_ref.shape
    n_chunks = Sp // s_chunk

    wq_b = wq_ref[...][:, None, :]               # (TB, 1, Hp) f32, hoisted
    wc_b = wc_ref[...].reshape(1, 1, Hp)         # (1, 1, Hp)  f32, hoisted
    wvt = wvt_ref[...]                           # (Hp, Hp)    MXU dtype

    def chunk_scores(v_c):
        """Scores for one S-chunk: MXU matmul -> EUP tanh -> VPU mul + lane reduce."""
        sc_len = v_c.shape[1]
        wv = jnp.dot(v_c.reshape(TB * sc_len, Hp), wvt,
                     preferred_element_type=jnp.float32
                     ).reshape(TB, sc_len, Hp)                     # MXU
        combined = jnp.tanh((wq_b + wv).astype(elem_dtype))        # EUP
        # H->1 contraction on VPU (mul) + XLU (lane reduce): keeps the skinny
        # N=1 matmul off the MXU and overlaps with the projection matmul.
        return jnp.sum((combined * wc_b).astype(jnp.float32), axis=-1)

    # ---- pass 1: raw attention scores (S-chunked to bound f32 temps) -------
    if n_chunks == 1:
        raw = chunk_scores(v_ref[...])
    else:
        def score_body(c, carry):
            off = pl.multiple_of(c * s_chunk, s_chunk)
            att_ref[:, pl.ds(off, s_chunk)] = chunk_scores(
                v_ref[:, pl.ds(off, s_chunk), :])
            return carry
        lax.fori_loop(0, n_chunks, score_body, 0)
        raw = att_ref[...]

    # ---- masked softmax over the (padded) sequence axis, f32 ---------------
    scores = jnp.where(m_ref[...] == 0, _NEG_LARGE, raw)
    smax = jnp.max(scores, axis=-1, keepdims=True)
    e = jnp.exp(scores - smax)
    w = e * pl.reciprocal(jnp.sum(e, axis=-1, keepdims=True))      # (TB, Sp)
    att_ref[...] = w.astype(att_ref.dtype)

    # ---- pass 2: context = sum_s w * v  (VPU mul + sublane reduce) ---------
    if n_chunks == 1:
        ctx = jnp.sum(w[:, :, None] * v_ref[...].astype(jnp.float32), axis=1)
    else:
        def ctx_body(c, acc):
            off = pl.multiple_of(c * s_chunk, s_chunk)
            w_c = att_ref[:, pl.ds(off, s_chunk)]
            v_c = v_ref[:, pl.ds(off, s_chunk), :].astype(jnp.float32)
            return acc + jnp.sum(w_c[:, :, None] * v_c, axis=1)
        ctx = lax.fori_loop(0, n_chunks, ctx_body,
                            jnp.zeros((TB, Hp), jnp.float32))
    ctx_ref[...] = ctx.astype(ctx_ref.dtype)


def additive_attention(query, values, mask, params, *,
                       mxu_dtype=jnp.bfloat16, elem_dtype=jnp.float32,
                       max_block_b=256):
    """query: (1, B, H), values: (B, S, H), mask: (B, S) -> (ctx (B,H), att (B,S)).

    mxu_dtype : dtype of the MXU operands (values, Wv^T).  bf16 is MXU-native
                on v5e/v6e/v7x and halves the dominant HBM read.
    elem_dtype: dtype the tanh is evaluated in.  Keep f32 on v5e (no bf16
                VPU/EUP); bf16 doubles EUP tanh throughput on v6e/v7x.
    """
    Wq, bq, Wv, bv, Wc = (params["Wq"], params["bq"], params["Wv"],
                          params["bv"], params["Wc"])
    # params["bc"] is intentionally unused: softmax is shift-invariant, so the
    # combined-layer bias cancels exactly.
    B, S, H = values.shape
    if mxu_dtype is None:
        mxu_dtype = jnp.float32

    # Hoisted query projection: one batched XLA matmul for all B rows.
    #   tanh((qWq^T + bq) + (vWv^T + bv)) == tanh((qWq^T + bq + bv) + vWv^T)
    wq_all = (jnp.transpose(query, (1, 0, 2)).reshape(B, H) @ Wq.T
              + bq + bv).astype(jnp.float32)

    # ---- aligned / padded geometry ------------------------------------------
    Hp = _round_up(H, 128)                 # lane-dense H everywhere
    s_align = 128 if S >= 128 else 16      # sublane-safe reshape; lane-dense
    Sp = _round_up(S, s_align)             #   attention stores once S is large
    SC = 128 if Sp % 128 == 0 else Sp      # in-kernel S chunk (bounds temps)
    assert Sp % SC == 0

    bytes_v = jnp.dtype(mxu_dtype).itemsize
    bytes_e = jnp.dtype(elem_dtype).itemsize

    # ---- VMEM-budgeted batch tile -------------------------------------------
    vmem_cap = _vmem_capacity_bytes()
    budget = int(vmem_cap * 0.6)           # headroom for compiler temporaries
    weight_bytes = Hp * Hp * bytes_v * 2 + Hp * 4 * 2     # Wv^T (x2 buf) + wc
    per_row = (Sp * Hp * 2 * bytes_v                       # values block (x2 buf)
               + SC * Hp * (bytes_v + bytes_e + 12)        # chunk temps (v, wv, tanh, ctx)
               + Sp * (4 * 2 + 4 * 2)                      # att out + mask (x2 buf)
               + Hp * (4 * 2 + 4 * 2))                     # wq in + ctx out (x2 buf)
    tb = max(8, ((budget - weight_bytes) // per_row // 8) * 8)
    tb = min(tb, max_block_b)
    # TODO(synk): if a single batch row exceeds the budget (huge S*H), the S/H
    # contraction itself must be tiled over the grid; not needed at these sizes.

    # >= 2 grid steps whenever possible so both TensorCores on v7x get work.
    n_steps = max(_cdiv(B, tb), 2 if B >= 16 else 1)
    if n_steps == 1:
        TB, Bp = B, B                      # block == full dim: no alignment needed
    else:
        TB = _round_up(_cdiv(B, n_steps), 8)
        Bp = n_steps * TB

    # ---- wrapper-side padding: kernel never relayouts or transposes ---------
    wvt = _pad_to(Wv.T.astype(mxu_dtype), (Hp, Hp))              # (Hp, Hp)
    wc_row = _pad_to(Wc.astype(jnp.float32).reshape(1, H), (1, Hp))
    wq_p = _pad_to(wq_all, (Bp, Hp))
    vals_p = _pad_to(values.astype(mxu_dtype), (Bp, Sp, Hp))
    # int32 mask; padded positions are 0 => masked out of the softmax.
    # (int8 would cut mask traffic 4x but it is <1% of the values read.)
    mask_p = _pad_to(mask.astype(jnp.int32), (Bp, Sp))

    kernel = functools.partial(_additive_attention_kernel,
                               s_chunk=SC, elem_dtype=elem_dtype)

    cost = pl.CostEstimate(
        flops=int(2 * Bp * Sp * Hp * Hp + 4 * Bp * Sp * Hp),
        transcendentals=int(Bp * Sp * Hp + Bp * Sp),
        bytes_accessed=int(Bp * Sp * Hp * bytes_v + Bp * Sp * 8 + Bp * Hp * 8
                           + Hp * Hp * bytes_v + Hp * 4),
    )

    ctx, att = pl.pallas_call(
        kernel,
        out_shape=(jax.ShapeDtypeStruct((Bp, Hp), jnp.float32),
                   jax.ShapeDtypeStruct((Bp, Sp), jnp.float32)),
        grid_spec=pltpu.PrefetchScalarGridSpec(
            num_scalar_prefetch=0,
            grid=(Bp // TB,),
            in_specs=[
                pl.BlockSpec((TB, Hp), lambda b: (b, 0)),         # q proj (+bq+bv)
                pl.BlockSpec((TB, Sp, Hp), lambda b: (b, 0, 0)),  # values
                pl.BlockSpec((TB, Sp), lambda b: (b, 0)),         # mask
                pl.BlockSpec((Hp, Hp), lambda b: (0, 0)),         # Wv^T (resident)
                pl.BlockSpec((1, Hp), lambda b: (0, 0)),          # Wc row (resident)
            ],
            out_specs=[
                pl.BlockSpec((TB, Hp), lambda b: (b, 0)),         # context
                pl.BlockSpec((TB, Sp), lambda b: (b, 0)),         # attention
            ],
        ),
        compiler_params=pltpu.CompilerParams(
            dimension_semantics=("parallel",),
            vmem_limit_bytes=int(min(vmem_cap, 128 * 1024 * 1024)),
        ),
        cost_estimate=cost,
    )(wq_p, vals_p, mask_p, wvt, wc_row)

    return ctx[:B, :H], att[:B, :S]


def _reference(query, values, mask, params):
    """Plain-JAX reference mirroring the PyTorch forward."""
    Wq, bq, Wv, bv, Wc, bc = (params["Wq"], params["bq"], params["Wv"],
                              params["bv"], params["Wc"], params["bc"])
    wq = jnp.transpose(query, (1, 0, 2)) @ Wq.T + bq            # (B, 1, H)
    wv = values @ Wv.T + bv                                     # (B, S, H)
    combined = jnp.tanh(wq + wv)                                # (B, S, H)
    scores = (combined @ Wc.T + bc)[..., 0]                     # (B, S)
    scores = jnp.where(mask == 0, -jnp.inf, scores)
    w = jax.nn.softmax(scores, axis=-1)                         # (B, S)
    ctx = jnp.einsum("bs,bsh->bh", w, values)                   # (B, H)
    return ctx, w


def init_params(key, hidden_size):
    """Deterministic nn.Linear-style init: U(-1/sqrt(fan_in), 1/sqrt(fan_in))."""
    ks = jax.random.split(key, 6)
    bound = 1.0 / np.sqrt(hidden_size)
    u = lambda k, shape: jax.random.uniform(k, shape, jnp.float32, -bound, bound)
    return {
        "Wq": u(ks[0], (hidden_size, hidden_size)),
        "bq": u(ks[1], (hidden_size,)),
        "Wv": u(ks[2], (hidden_size, hidden_size)),
        "bv": u(ks[3], (hidden_size,)),
        "Wc": u(ks[4], (1, hidden_size)),
        "bc": u(ks[5], (1,)),
    }


if __name__ == "__main__":
    root = jax.random.PRNGKey(0)

    def check(B, S, H, *, mxu_dtype, elem_dtype, rtol, atol, key):
        kq, kv, km, kp = jax.random.split(key, 4)
        query = jax.random.normal(kq, (1, B, H), jnp.float32)   # (num_layers=1, B, H)
        values = jax.random.normal(kv, (B, S, H), jnp.float32)
        mask = (jax.random.uniform(km, (B, S)) > 0.3).astype(jnp.int32)
        mask = mask.at[:, 0].set(1)          # at least one valid position per row
        params = init_params(kp, H)

        ctx, att = additive_attention(query, values, mask, params,
                                      mxu_dtype=mxu_dtype, elem_dtype=elem_dtype)
        jax.block_until_ready((ctx, att))

        ctx_ref, att_ref = _reference(query, values, mask, params)
        np.testing.assert_allclose(np.asarray(ctx), np.asarray(ctx_ref),
                                   rtol=rtol, atol=atol)
        np.testing.assert_allclose(np.asarray(att), np.asarray(att_ref),
                                   rtol=rtol, atol=atol)

    k1, k2 = jax.random.split(root)
    # Exact-parity check: f32 MXU path, tiny shapes (single step, single chunk).
    check(2, 8, 32, mxu_dtype=jnp.float32, elem_dtype=jnp.float32,
          rtol=1e-5, atol=1e-5, key=k1)
    # Default fast path: bf16 MXU operands, multi-step grid, padded H (96->128).
    check(16, 64, 96, mxu_dtype=jnp.bfloat16, elem_dtype=jnp.float32,
          rtol=3e-2, atol=3e-2, key=k2)

    print("KERNEL_OK")
</pallas_src>

<mosaic_0001>
module attributes {stable_mosaic.version = 11 : i64} {
  func.func @_additive_attention_kernel(%arg0: i32, %arg1: memref<2x128xf32, #tpu.memory_space<vmem>>, %arg2: memref<2x16x128xf32, #tpu.memory_space<vmem>>, %arg3: memref<2x16xi32, #tpu.memory_space<vmem>>, %arg4: memref<128x128xf32, #tpu.memory_space<vmem>>, %arg5: memref<1x128xf32, #tpu.memory_space<vmem>>, %arg6: memref<2x128xf32, #tpu.memory_space<vmem>>, %arg7: memref<2x16xf32, #tpu.memory_space<vmem>>) attributes {dimension_semantics = [#tpu.dimension_semantics<parallel>], iteration_bounds = array<i64: 1>, scalar_prefetch = 0 : i64, scratch_operands = 0 : i64, tpu.core_type = #tpu.core_type<tc>, window_params = [{transform_indices = @transform_0, window_bounds = array<i64: 2, 128>}, {transform_indices = @transform_1, window_bounds = array<i64: 2, 16, 128>}, {transform_indices = @transform_2, window_bounds = array<i64: 2, 16>}, {pipeline_mode = #tpu.pipeline_mode<synchronous>, transform_indices = @transform_3, window_bounds = array<i64: 128, 128>}, {pipeline_mode = #tpu.pipeline_mode<synchronous>, transform_indices = @transform_4, window_bounds = array<i64: 1, 128>}, {transform_indices = @transform_5, window_bounds = array<i64: 2, 128>}, {transform_indices = @transform_6, window_bounds = array<i64: 2, 16>}]} {
    %c0 = arith.constant 0 : index
    %c0_0 = arith.constant 0 : index
    %0 = vector.load %arg1[%c0, %c0_0] : memref<2x128xf32, #tpu.memory_space<vmem>>, vector<2x128xf32>
    %1 = vector.shape_cast %0 : vector<2x128xf32> to vector<2x1x128xf32>
    %c0_1 = arith.constant 0 : index
    %c0_2 = arith.constant 0 : index
    %2 = vector.load %arg5[%c0_1, %c0_2] : memref<1x128xf32, #tpu.memory_space<vmem>>, vector<1x128xf32>
    %3 = vector.shape_cast %2 : vector<1x128xf32> to vector<1x1x128xf32>
    %c0_3 = arith.constant 0 : index
    %c0_4 = arith.constant 0 : index
    %4 = vector.load %arg4[%c0_3, %c0_4] : memref<128x128xf32, #tpu.memory_space<vmem>>, vector<128x128xf32>
    %c0_5 = arith.constant 0 : index
    %c0_6 = arith.constant 0 : index
    %c0_7 = arith.constant 0 : index
    %5 = vector.load %arg2[%c0_5, %c0_6, %c0_7] : memref<2x16x128xf32, #tpu.memory_space<vmem>>, vector<2x16x128xf32>
    %6 = vector.shape_cast %5 : vector<2x16x128xf32> to vector<32x128xf32>
    %cst = arith.constant dense<0.000000e+00> : vector<32x128xf32>
    %7 = tpu.matmul %6, %4, %cst {dimension_numbers = #tpu.dot_dimension_numbers<[1], [0], [0], [1], [0, 0, 1, 1], [], []>} : vector<32x128xf32>, vector<128x128xf32>, vector<32x128xf32> -> vector<32x128xf32>
    %8 = vector.shape_cast %7 : vector<32x128xf32> to vector<2x16x128xf32>
    %9 = vector.broadcast %1 : vector<2x1x128xf32> to vector<2x16x128xf32>
    %10 = arith.addf %9, %8 : vector<2x16x128xf32>
    %11 = math.tanh %10 : vector<2x16x128xf32>
    %12 = vector.broadcast %3 : vector<1x1x128xf32> to vector<2x16x128xf32>
    %13 = arith.mulf %11, %12 : vector<2x16x128xf32>
    %cst_8 = arith.constant dense<0.000000e+00> : vector<2x16xf32>
    %14 = vector.multi_reduction <add>, %13, %cst_8 [2] : vector<2x16x128xf32> to vector<2x16xf32>
    %c0_9 = arith.constant 0 : index
    %c0_10 = arith.constant 0 : index
    %15 = vector.load %arg3[%c0_9, %c0_10] : memref<2x16xi32, #tpu.memory_space<vmem>>, vector<2x16xi32>
    %c0_i32 = arith.constant 0 : i32
    %16 = vector.broadcast %c0_i32 : i32 to vector<2x16xi32>
    %17 = arith.cmpi eq, %15, %16 : vector<2x16xi32>
    %cst_11 = arith.constant -1.000000e+30 : f32
    %18 = vector.broadcast %cst_11 : f32 to vector<2x16xf32>
    %19 = arith.select %17, %18, %14 : vector<2x16xi1>, vector<2x16xf32>
    %cst_12 = arith.constant dense<0xFF800000> : vector<2xf32>
    %20 = vector.multi_reduction <maximumf>, %19, %cst_12 [1] : vector<2x16xf32> to vector<2xf32>
    %21 = vector.shape_cast %20 : vector<2xf32> to vector<2x1xf32>
    %22 = vector.broadcast %21 : vector<2x1xf32> to vector<2x16xf32>
    %23 = arith.subf %19, %22 : vector<2x16xf32>
    %24 = math.exp %23 : vector<2x16xf32>
    %cst_13 = arith.constant dense<0.000000e+00> : vector<2xf32>
    %25 = vector.multi_reduction <add>, %24, %cst_13 [1] : vector<2x16xf32> to vector<2xf32>
    %26 = vector.shape_cast %25 : vector<2xf32> to vector<2x1xf32>
    %27 = tpu.reciprocal %26 : vector<2x1xf32> -> vector<2x1xf32>
    %28 = vector.broadcast %27 : vector<2x1xf32> to vector<2x16xf32>
    %29 = arith.mulf %24, %28 : vector<2x16xf32>
    %c0_14 = arith.constant 0 : index
    %c0_15 = arith.constant 0 : index
    %30 = vector.load %arg7[%c0_14, %c0_15] : memref<2x16xf32, #tpu.memory_space<vmem>>, vector<2x16xf32>
    tpu.vector_store %arg7[%c0_14, %c0_15], %29 {strides = array<i32>} : memref<2x16xf32, #tpu.memory_space<vmem>>, vector<2x16xf32>,
    %31 = vector.shape_cast %29 : vector<2x16xf32> to vector<2x16x1xf32>
    %c0_16 = arith.constant 0 : index
    %c0_17 = arith.constant 0 : index
    %c0_18 = arith.constant 0 : index
    %32 = vector.load %arg2[%c0_16, %c0_17, %c0_18] : memref<2x16x128xf32, #tpu.memory_space<vmem>>, vector<2x16x128xf32>
    %33 = vector.broadcast %31 : vector<2x16x1xf32> to vector<2x16x128xf32>
    %34 = arith.mulf %33, %32 : vector<2x16x128xf32>
    %cst_19 = arith.constant dense<0.000000e+00> : vector<2x128xf32>
    %35 = vector.multi_reduction <add>, %34, %cst_19 [1] : vector<2x16x128xf32> to vector<2x128xf32>
    %c0_20 = arith.constant 0 : index
    %c0_21 = arith.constant 0 : index
    %36 = vector.load %arg6[%c0_20, %c0_21] : memref<2x128xf32, #tpu.memory_space<vmem>>, vector<2x128xf32>
    tpu.vector_store %arg6[%c0_20, %c0_21], %35 {strides = array<i32>} : memref<2x128xf32, #tpu.memory_space<vmem>>, vector<2x128xf32>,
    return
  }
  func.func @transform_0(%arg0: i32) -> (i32, i32) {
    %c0_i32 = arith.constant 0 : i32
    %c0_i32_0 = arith.constant 0 : i32
    return %arg0, %c0_i32 : i32, i32
  }
  func.func @transform_1(%arg0: i32) -> (i32, i32, i32) {
    %c0_i32 = arith.constant 0 : i32
    %c0_i32_0 = arith.constant 0 : i32
    %c0_i32_1 = arith.constant 0 : i32
    return %arg0, %c0_i32, %c0_i32_0 : i32, i32, i32
  }
  func.func @transform_2(%arg0: i32) -> (i32, i32) {
    %c0_i32 = arith.constant 0 : i32
    %c0_i32_0 = arith.constant 0 : i32
    return %arg0, %c0_i32 : i32, i32
  }
  func.func @transform_3(%arg0: i32) -> (i32, i32) {
    %c0_i32 = arith.constant 0 : i32
    %c0_i32_0 = arith.constant 0 : i32
    %c0_i32_1 = arith.constant 0 : i32
    return %c0_i32, %c0_i32_0 : i32, i32
  }
  func.func @transform_4(%arg0: i32) -> (i32, i32) {
    %c0_i32 = arith.constant 0 : i32
    %c0_i32_0 = arith.constant 0 : i32
    %c0_i32_1 = arith.constant 0 : i32
    return %c0_i32, %c0_i32_0 : i32, i32
  }
  func.func @transform_5(%arg0: i32) -> (i32, i32) {
    %c0_i32 = arith.constant 0 : i32
    %c0_i32_0 = arith.constant 0 : i32
    return %arg0, %c0_i32 : i32, i32
  }
  func.func @transform_6(%arg0: i32) -> (i32, i32) {
    %c0_i32 = arith.constant 0 : i32
    %c0_i32_0 = arith.constant 0 : i32
    return %arg0, %c0_i32 : i32, i32
  }
}

</mosaic_0001>

<bundles_post_ra>
// kernel: tpu_custom_call.1
= control target key start
LH: loop header
LB: loop body
LE: loop exit
PB: predicated region body
PF: predicated region fallthrough
CT: control target
= control target key end

     0   :  { %12 = vsyncpa [#allocation3], 0  ;;  %s833_s0 = inlined_call_operand.hbm [shape: f32[2,128], index: 0, kind: input, shape index: {}]   ;;  %s834_s1 = inlined_call_operand.hbm [shape: f32[2,16,128], index: 1, kind: input, shape index: {}]   ;;  %s835_s2 = inlined_call_operand.hbm [shape: s32[2,16], index: 2, kind: input, shape index: {}]   ;;  %s836_s3 = inlined_call_operand.hbm [shape: f32[128,128], index: 3, kind: input, shape index: {}]   ;;  %s837_s4 = inlined_call_operand.hbm [shape: f32[1,128], index: 4, kind: input, shape index: {}]   ;;  %s838_s5 = inlined_call_operand.hbm [shape: f32[2,128], index: 5, kind: output, shape index: {0}]   ;;  %s839_s6 = inlined_call_operand.hbm [shape: f32[2,16], index: 6, kind: output, shape index: {1}]  }
   0x1   :  { %13 = vsyncpa [#allocation6], 0 }
   0x2   :  { %14 = vsyncpa [#allocation9], 0 }
   0x3   :  { %15 = vsyncpa [#allocation4], 0 }
   0x4   :  { %16 = vsyncpa [#allocation13], 0  ;;  %s671_s21 = smov [#allocation5]   ;;  %s507_s25 = scalar_lea.hbm %s834_s1, 512 }
   0x5   :  { %s32_s22 = sshll.u32 %s671_s21, 4  ;;  %p508_p0 = scmp.ne.s32.totalorder %s834_s1, %s507_s25  ;;  %s33_s22 = int_to_ptr.vmem [resolvable:$true] %s32_s22 }
   0x6   :  { %p511_p1 = scmp.lt.u32.totalorder %s507_s25, %s834_s1 }
   0x8   :  { %p513_p2 = pnand %p511_p1, %p508_p0 }
   0xa   :  { %516 = shalt.err (!%p513_p2)
}
   0xb   :  { %s517_s30 = scalar_lea.vmem %s33_s22, 512  ;;  %p522_p4 = scmp.lt.s32.totalorder %s33_s22, %s33_s22 }
   0xc   :  { %p518_p3 = scmp.ne.s32.totalorder %s33_s22, %s517_s30  ;;  %p523_p5 = scmp.lt.s32.totalorder %s517_s30, %s517_s30 }
   0xe   :  { %p524_p6 = por %p523_p5, %p522_p4 }
  0x10   :  { %p525_p7 = pnand %p524_p6, %p518_p3 }
  0x12   :  { %528 = shalt.err (!%p525_p7)
}
  0x13   :  { %s672_s7 = smov 128   ;;  %s673_s8 = smov 8  }
  0x14   :  { %38 = dma.hbm_to_vmem [thread:$0]  %s834_s1, 512, %s33_s22, [#allocation6], %s672_s7, %s672_s7, %s673_s8  }
  0x15   :  { %s674_s11 = smov [#allocation8]   ;;  %s675_s13 = smov [#allocation2]  }
  0x16   :  { %s54_s12 = sshll.u32 %s674_s11, 4  ;;  %s23_s14 = sshll.u32 %s675_s13, 4  ;;  %s55_s12 = int_to_ptr.vmem [resolvable:$true] %s54_s12  ;;  %s24_s14 = int_to_ptr.vmem [resolvable:$true] %s23_s14 }
  0x17   :  { %s529_s17 = scalar_lea.hbm %s836_s3, 2048 }
  0x18   :  { %p530_p8 = scmp.ne.s32.totalorder %s836_s3, %s529_s17  ;;  %p533_p9 = scmp.lt.u32.totalorder %s529_s17, %s836_s3 }
  0x1a   :  { %p535_p10 = pnand %p533_p9, %p530_p8 }
  0x1c   :  { %538 = shalt.err (!%p535_p10)
}
  0x1d   :  { %s539_s1 = scalar_lea.vmem %s55_s12, 2048  ;;  %p544_p12 = scmp.lt.s32.totalorder %s55_s12, %s55_s12 }
  0x1e   :  { %p540_p11 = scmp.ne.s32.totalorder %s55_s12, %s539_s1  ;;  %p545_p13 = scmp.lt.s32.totalorder %s539_s1, %s539_s1 }
  0x20   :  { %p546_p0 = por %p545_p13, %p544_p12 }
  0x22   :  { %p547_p1 = pnand %p546_p0, %p540_p11 }
  0x24   :  { %550 = shalt.err (!%p547_p1)
}
  0x25   :  { %60 = dma.hbm_to_vmem [thread:$0]  %s836_s3, 2048, %s55_s12, [#allocation9], %s672_s7, %s672_s7, %s673_s8  }
  0x26   :  { %s551_s26 = scalar_lea.hbm %s833_s0, 32 }
  0x27   :  { %p552_p2 = scmp.ne.s32.totalorder %s833_s0, %s551_s26  ;;  %p555_p3 = scmp.lt.u32.totalorder %s551_s26, %s833_s0 }
  0x29   :  { %p557_p4 = pnand %p555_p3, %p552_p2 }
  0x2b   :  { %560 = shalt.err (!%p557_p4)
}
  0x2c   :  { %s561_s9 = scalar_lea.vmem %s24_s14, 32  ;;  %p566_p6 = scmp.lt.s32.totalorder %s24_s14, %s24_s14 }
  0x2d   :  { %p562_p5 = scmp.ne.s32.totalorder %s24_s14, %s561_s9  ;;  %p567_p7 = scmp.lt.s32.totalorder %s561_s9, %s561_s9 }
  0x2f   :  { %p568_p8 = por %p567_p7, %p566_p6 }
  0x31   :  { %p569_p9 = pnand %p568_p8, %p562_p5 }
  0x33   :  { %572 = shalt.err (!%p569_p9)
}
  0x34   :  { %26 = dma.hbm_to_vmem [thread:$0]  %s833_s0, 32, %s24_s14, [#allocation3]  }
  0x35   :  { %s676_s8 = smov [#allocation7]   ;;  %s677_s11 = smov [#allocation10]  }
  0x36   :  { %s45_s10 = sshll.u32 %s676_s8, 4  ;;  %s67_s12 = sshll.u32 %s677_s11, 4  ;;  %s46_s10 = int_to_ptr.vmem [resolvable:$true] %s45_s10  ;;  %s68_s12 = int_to_ptr.vmem [resolvable:$true] %s67_s12 }
  0x37   :  { %s573_s16 = scalar_lea.hbm %s835_s2, 32 }
  0x38   :  { %p574_p10 = scmp.ne.s32.totalorder %s835_s2, %s573_s16  ;;  %p577_p11 = scmp.lt.u32.totalorder %s573_s16, %s835_s2 }
  0x3a   :  { %p579_p12 = pnand %p577_p11, %p574_p10 }
  0x3c   :  { %582 = shalt.err (!%p579_p12)
}
  0x3d   :  { %s583_s0 = scalar_lea.vmem %s46_s10, 32  ;;  %p588_p0 = scmp.lt.s32.totalorder %s46_s10, %s46_s10 }
  0x3e   :  { %p584_p13 = scmp.ne.s32.totalorder %s46_s10, %s583_s0  ;;  %p589_p1 = scmp.lt.s32.totalorder %s583_s0, %s583_s0 }
  0x40   :  { %p590_p2 = por %p589_p1, %p588_p0 }
  0x42   :  { %p591_p3 = pnand %p590_p2, %p584_p13 }
  0x44   :  { %594 = shalt.err (!%p591_p3)
}
  0x45   :  { %48 = dma.hbm_to_vmem [thread:$0]  %s835_s2, 32, %s46_s10, [#allocation6]  }
  0x46   :  { %s595_s23 = scalar_lea.hbm %s837_s4, 16 }
  0x47   :  { %p596_p4 = scmp.ne.s32.totalorder %s837_s4, %s595_s23  ;;  %p599_p5 = scmp.lt.u32.totalorder %s595_s23, %s837_s4 }
  0x49   :  { %p601_p6 = pnand %p599_p5, %p596_p4 }
  0x4b   :  { %604 = shalt.err (!%p601_p6)
}
  0x4c   :  { %s605_s28 = scalar_lea.vmem %s68_s12, 16  ;;  %s609_s29 = scalar_lea.vmem %s68_s12, 32 }
  0x4d   :  { %p606_p7 = scmp.ne.s32.totalorder %s68_s12, %s605_s28  ;;  %p610_p8 = scmp.lt.s32.totalorder %s68_s12, %s68_s12 }
  0x4e   :  { %p611_p9 = scmp.lt.s32.totalorder %s609_s29, %s605_s28 }
  0x50   :  { %p612_p10 = por %p611_p9, %p610_p8 }
  0x52   :  { %p613_p11 = pnand %p612_p10, %p606_p7 }
  0x54   :  { %616 = shalt.err (!%p613_p11)
}
  0x55   :  { %70 = dma.hbm_to_vmem [thread:$0]  %s837_s4, 16, %s68_s12, [#allocation9]  }
  0x56   :  { %661 = dma.done.wait [#allocation3], 32  }
  0x57   :  { %662 = vsyncadd [#allocation3], 4294967264 }
  0x58   :  { %663 = dma.done.wait [#allocation6], 544  }
  0x59   :  { %664 = vsyncadd [#allocation6], 4294966752 }
  0x5a   :  { %665 = dma.done.wait [#allocation9], 2064  }
  0x5b   :  { %666 = vsyncadd [#allocation9], 4294965232  ;;  %v111_v0 = vld [vmem:[#allocation8] sm:$0xff]  ;;  %v112_v1 = vld [vmem:[#allocation8 + $0x8] sm:$0xff]  ;;  %v678_v28 = vmov 1966171168   ;;  %v99_v30 = vlaneseq }
  0x5c   :  { %v113_v2 = vld [vmem:[#allocation8 + $0x10] sm:$0xff]  ;;  %v437_v3 = vpack.c.bf16 %v112_v1, %v111_v0  ;;  %v114_v4 = vld [vmem:[#allocation8 + $0x18] sm:$0xff]  ;;  %v115_v6 = vld [vmem:[#allocation8 + $0x20] sm:$0xff]  ;;  %v97_v29 = vunpack.c.l.s4 %v678_v28  ;;  %vm269_vm0 = vcmask 130112   ;;  %vm280_vm1 = vcmask 1041409   ;;  %s679_s4 = smov [#allocation12]  }
  0x5d   :  { %v441_v5 = vpack.c.bf16 %v114_v4, %v113_v2  ;;  %v116_v7 = vld [vmem:[#allocation8 + $0x28] sm:$0xff]  ;;  %v776_v9 = vld [vmem:[#allocation5] sm:$0xff]  ;;  %v117_v11 = vld [vmem:[#allocation8 + $0x30] sm:$0xff]  ;;  %v788_v32 = vshrl.u32 %v99_v30, 7  ;;  %v259_v58 = vand.u32 127, %v99_v30  ;;  %vm284_vm3 = vcmask 123904  }
  0x5e   :  { %438 = vmatprep.subr.bf16.mxu0 %v437_v3  ;;  %469 = vmatprep.subr.bf16.mxu1 %v437_v3  ;;  %v445_v8 = vpack.c.bf16 %v116_v7, %v115_v6  ;;  %v778_v10 = vld [vmem:[#allocation5 + $0x10] sm:$0xff]  ;;  %v118_v12 = vld [vmem:[#allocation8 + $0x38] sm:$0xff]  ;;  %v119_v14 = vld [vmem:[#allocation8 + $0x40] sm:$0xff]  ;;  %v98_v31 = vunpack.c.0.s8 %v97_v29  ;;  %s362_s9 = sshll.u32 %s679_s4, 4  ;;  %s363_s9 = int_to_ptr.vmem [resolvable:$true] %s362_s9 }
  0x5f   :  { %440 = vmatpush3.bf16.msra.mxu0 %v437_v3  ;;  %477 = vmatpush3.bf16.msra.mxu1 %v437_v3  ;;  %v449_v13 = vpack.c.bf16 %v118_v12, %v117_v11  ;;  %v120_v15 = vld [vmem:[#allocation8 + $0x48] sm:$0xff]  ;;  %v121_v17 = vld [vmem:[#allocation8 + $0x50] sm:$0xff]  ;;  %v122_v18 = vld [vmem:[#allocation8 + $0x58] sm:$0xff]  ;;  %v792_v37 = vsub.s32 0, %v788_v32  ;;  %v264_v59 = vadd.s32 4294967288, %v259_v58  ;;  %v262_v61 = vsub.s32 %v259_v58, %v788_v32  ;;  %s617_s3 = scalar_lea.vmem %s363_s9, 32  ;;  %p622_p13 = scmp.lt.s32.totalorder %s363_s9, %s363_s9 }
  0x60   :  { %442 = vmatprep.subr.bf16.mxu0 %v441_v5  ;;  %470 = vmatprep.subr.bf16.mxu1 %v441_v5  ;;  %v453_v16 = vpack.c.bf16 %v120_v15, %v119_v14  ;;  %v457_v19 = vpack.c.bf16 %v122_v18, %v121_v17  ;;  %v123_v20 = vld [vmem:[#allocation8 + $0x60] sm:$0xff]  ;;  %v124_v21 = vld [vmem:[#allocation8 + $0x68] sm:$0xff]  ;;  %v125_v23 = vld [vmem:[#allocation8 + $0x70] sm:$0xff]  ;;  %v101_v34 = vsub.s32 %v98_v31, %v788_v32  ;;  %p618_p12 = scmp.ne.s32.totalorder %s363_s9, %s617_s3  ;;  %p623_p0 = scmp.lt.s32.totalorder %s617_s3, %s617_s3 }
  0x61   :  { %431 = vmatprep.mubr.f32.mxu0 %v776_v9  ;;  %434 = vmatprep.mubr.f32.mxu1 %v778_v10  ;;  %v461_v22 = vpack.c.bf16 %v124_v21, %v123_v20  ;;  %v126_v24 = vld [vmem:[#allocation8 + $0x78] sm:$0xff]  ;;  %v782_v26 = vld [vmem:[#allocation5 + $0x8] sm:$0xff]  ;;  %v378_v49 = vld [vmem:[#allocation10] ss:$0 sm:$0xff]  ;;  %v267_v63 = vsub.s32 %v264_v59, %v788_v32 }
  0x62   :  { %v465_v25 = vpack.c.bf16 %v126_v24, %v125_v23  ;;  %v784_v27 = vld [vmem:[#allocation5 + $0x18] sm:$0xff]  ;;  %v252_v1 = vld [vmem:[#allocation7] sm:$0x3]  ;;  %v310_v23 = vsub.s32 1, %v788_v32  ;;  %p624_p1 = por %p623_p0, %p622_p13 }
  0x63   :  { %444 = vmatpush3.bf16.msra.mxu0 %v441_v5  ;;  %478 = vmatpush3.bf16.msra.mxu1 %v441_v5  ;;  %v377_v33 = vld.sshfl [vmem:[#allocation2] sm:$0x11 pattern:$0x75316420]  ;;  %vm253_vm2 = vcmp.eq.s32.totalorder %v252_v1, 0 }
  0x64   :  { %446 = vmatprep.subr.bf16.mxu0 %v445_v8  ;;  %471 = vmatprep.subr.bf16.mxu1 %v445_v8  ;;  %v95_v35 = vcombine.high %v377_v33, %v377_v33  ;;  %v102_v36 = vrot.slane %v377_v33, %v101_v34  ;;  %p625_p2 = pnand %p624_p1, %p618_p12 }
  0x66   :  { %v109_v38 = vrot.slane %v95_v35, %v101_v34  ;;  %v219_v39 = vrot.slane %v102_v36, %v792_v37 }
  0x67   :  { %448 = vmatpush3.bf16.msra.mxu0 %v445_v8  ;;  %479 = vmatpush3.bf16.msra.mxu1 %v445_v8 }
  0x68   :  { %450 = vmatprep.subr.bf16.mxu0 %v449_v13  ;;  %472 = vmatprep.subr.bf16.mxu1 %v449_v13  ;;  %v223_v40 = vrot.slane %v109_v38, %v792_v37 }
  0x6b   :  { %452 = vmatpush3.bf16.msra.mxu0 %v449_v13  ;;  %480 = vmatpush3.bf16.msra.mxu1 %v449_v13 }
  0x6c   :  { %454 = vmatprep.subr.bf16.mxu0 %v453_v16  ;;  %473 = vmatprep.subr.bf16.mxu1 %v453_v16 }
  0x6f   :  { %456 = vmatpush3.bf16.msra.mxu0 %v453_v16  ;;  %481 = vmatpush3.bf16.msra.mxu1 %v453_v16 }
  0x70   :  { %458 = vmatprep.subr.bf16.mxu0 %v457_v19  ;;  %474 = vmatprep.subr.bf16.mxu1 %v457_v19 }
  0x73   :  { %460 = vmatpush3.bf16.msra.mxu0 %v457_v19  ;;  %482 = vmatpush3.bf16.msra.mxu1 %v457_v19 }
  0x74   :  { %462 = vmatprep.subr.bf16.mxu0 %v461_v22  ;;  %475 = vmatprep.subr.bf16.mxu1 %v461_v22 }
  0x77   :  { %464 = vmatpush3.bf16.msra.mxu0 %v461_v22  ;;  %483 = vmatpush3.bf16.msra.mxu1 %v461_v22 }
  0x78   :  { %466 = vmatprep.subr.bf16.mxu0 %v465_v25  ;;  %476 = vmatprep.subr.bf16.mxu1 %v465_v25 }
  0x7b   :  { %468 = vmatpush3.bf16.msra.mxu0 %v465_v25  ;;  %484 = vmatpush3.bf16.msra.mxu1 %v465_v25 }
  0x7e   :  { %432 = vmatmul.mubr.f32.vlgmr.msra.gmra.mrb[0].mxu0 %v782_v26  ;;  %435 = vmatmul.mubr.f32.vlgmr.msra.gmra.mrb[0].mxu1 %v784_v27 }
 0x151   :  { %v433_v41 = vpop.f32.mrb[0].mxu0  ;;  %v436_v42 = vpop.f32.mrb[0].mxu1 }
 0x152   :  { %v197_v43 = vpop.f32.mrb[1].mxu0  ;;  %v207_v44 = vpop.f32.mrb[1].mxu1  ;;  %v227_v47 = vadd.f32 %v433_v41, %v219_v39  ;;  %v229_v48 = vadd.f32 %v436_v42, %v223_v40 }
 0x153   :  { %v226_v45 = vadd.f32 %v219_v39, %v197_v43  ;;  %v228_v46 = vadd.f32 %v223_v40, %v207_v44 }
 0x155   :  { %495 = vtanh.f32 %v226_v45 }
 0x156   :  { %497 = vtanh.f32 %v228_v46 }
 0x157   :  { %499 = vtanh.f32 %v227_v47 }
 0x158   :  { %501 = vtanh.f32 %v229_v48 }
 0x15f   :  { %v496_v50 = vpop.eup %495 }
 0x160   :  { %v498_v51 = vpop.eup %497  ;;  %v240_v52 = vmul.f32 %v496_v50, %v378_v49 }
 0x161   :  { %v500_v53 = vpop.eup %499  ;;  %v242_v54 = vmul.f32 %v498_v51, %v378_v49 }
 0x162   :  { %v502_v55 = vpop.eup %501  ;;  %244 = vadd.xlane.f32.xlu0 %v240_v52  ;;  %v241_v56 = vmul.f32 %v500_v53, %v378_v49 }
 0x163   :  { %248 = vadd.xlane.f32.xlu1 %v242_v54  ;;  %v243_v57 = vmul.f32 %v502_v55, %v378_v49 }
 0x166   :  { %246 = vadd.xlane.f32.xlu0 %v241_v56 }
 0x167   :  { %250 = vadd.xlane.f32.xlu1 %v243_v57 }
 0x1ef   :  { %v245_v60 = vpop.xlane.xlu0 %244 }
 0x1f0   :  { %v249_v62 = vpop.xlane.xlu1 %248  ;;  %v263_v2 = vrot.slane %v245_v60, %v262_v61 }
 0x1f1   :  { %v274_v5 = vrot.slane %v249_v62, %v262_v61 }
 0x1f3   :  { %v247_v0 = vpop.xlane.xlu0 %246 }
 0x1f4   :  { %v268_v3 = vrot.slane %v247_v0, %v267_v63  ;;  %v251_v4 = vpop.xlane.xlu1 %250 }
 0x1f5   :  { %v278_v6 = vrot.slane %v251_v4, %v267_v63 }
 0x1f6   :  { %v270_v7 = vsel %vm269_vm0, %v268_v3, %v263_v2 }
 0x1f7   :  { %v279_v8 = vsel %vm269_vm0, %v278_v6, %v274_v5 }
 0x1f8   :  { %v281_v11 = vsel %vm280_vm1, %v279_v8, %v270_v7 }
 0x1f9   :  { %v283_v12 = vsel %vm253_vm2, -1e+30, %v281_v11 }
 0x1fa   :  { %v285_v13 = vsel %vm284_vm3, %v283_v12, -inf }
 0x1fb   :  { %286 = vmax.xlane.f32.xlu0 %v285_v13 }
 0x288   :  { %v287_v14 = vpop.xlane.xlu0 %286 }
 0x289   :  { %v288_v15 = vsub.f32 %v283_v12, %v287_v14 }
 0x28b   :  { %v289_v16 = vmul.f32 1.442695, %v288_v15 }
 0x28d   :  { %503 = vpow2.f32 %v289_v16 }
 0x297   :  { %v504_v17 = vpop.eup %503 }
 0x298   :  { %v291_v18 = vsel %vm284_vm3, %v504_v17, 0.0 }
 0x299   :  { %292 = vadd.xlane.f32.xlu1 %v291_v18 }
 0x326   :  { %v293_v19 = vpop.xlane.xlu1 %292 }
 0x327   :  { %505 = vrcp.f32 %v293_v19 }
 0x331   :  { %v506_v20 = vpop.eup %505 }
 0x332   :  { %v295_v21 = vmul.f32 %v506_v20, %v504_v17 }
 0x334   :  { %v300_v22 = vrot.slane %v295_v21, %v792_v37  ;;  %296 = vst.msk [vmem:[#allocation12] sm:$0x3] %vm284_vm3, %v295_v21  ;;  %v311_v24 = vrot.slane %v295_v21, %v310_v23 }
 0x336   :  { %306 = vbcast.lane.b32.xlu1 %v300_v22, 264  ;;  %302 = vbcast.lane.b32.xlu0 %v300_v22, 256 }
 0x33a   :  { %313 = vbcast.lane.b32.xlu1 %v311_v24, 256 }
 0x33e   :  { %317 = vbcast.lane.b32.xlu1 %v311_v24, 264 }
 0x33f   :  { %628 = shalt.err (!%p625_p2)
}
 0x340   :  { %s629_s10 = scalar_lea.hbm %s839_s6, 32 }
 0x341   :  { %p630_p3 = scmp.ne.s32.totalorder %s839_s6, %s629_s10  ;;  %p633_p4 = scmp.lt.u32.totalorder %s629_s10, %s839_s6 }
 0x343   :  { %p635_p5 = pnand %p633_p4, %p630_p3 }
 0x345   :  { %638 = shalt.err (!%p635_p5)
}
 0x346   :  { %365 = dma.vmem_to_hbm [thread:$0]  %s363_s9, 32, %s839_s6, [#allocation13]  }
 0x347   :  { %s680_s6 = smov [#allocation11]  }
 0x348   :  { %s352_s18 = sshll.u32 %s680_s6, 4  ;;  %s353_s18 = int_to_ptr.vmem [resolvable:$true] %s352_s18 }
 0x349   :  { %s639_s19 = scalar_lea.vmem %s353_s18, 32  ;;  %p644_p7 = scmp.lt.s32.totalorder %s353_s18, %s353_s18 }
 0x34a   :  { %p640_p6 = scmp.ne.s32.totalorder %s353_s18, %s639_s19  ;;  %p645_p8 = scmp.lt.s32.totalorder %s639_s19, %s639_s19 }
 0x34c   :  { %p646_p9 = por %p645_p8, %p644_p7 }
 0x34e   :  { %p647_p10 = pnand %p646_p9, %p640_p6 }
 0x3a8   :  { %v307_v25 = vpop.permute.xlu1 %306  ;;  %v303_v28 = vpop.permute.xlu0 %302 }
 0x3a9   :  { %v324_v29 = vmul.f32 %v307_v25, %v782_v26  ;;  %v323_v30 = vmul.f32 %v303_v28, %v776_v9 }
 0x3ab   :  { %v327_v31 = vadd.f32 %v324_v29, %v323_v30 }
 0x3ac   :  { %v314_v32 = vpop.permute.xlu1 %313 }
 0x3ad   :  { %v328_v33 = vrot.slane %v327_v31, 4  ;;  %v325_v36 = vmul.f32 %v314_v32, %v778_v10 }
 0x3af   :  { %v329_v34 = vadd.f32 %v328_v33, %v327_v31 }
 0x3b0   :  { %v318_v35 = vpop.permute.xlu1 %317 }
 0x3b1   :  { %v326_v37 = vmul.f32 %v318_v35, %v784_v27  ;;  %v330_v38 = vrot.slane %v329_v34, 2 }
 0x3b3   :  { %v334_v39 = vadd.f32 %v326_v37, %v325_v36  ;;  %v331_v41 = vadd.f32 %v330_v38, %v329_v34 }
 0x3b5   :  { %v335_v40 = vrot.slane %v334_v39, 4  ;;  %v332_v44 = vrot.slane %v331_v41, 1 }
 0x3b7   :  { %v336_v42 = vadd.f32 %v335_v40, %v334_v39  ;;  %v333_v9 = vadd.f32 %v332_v44, %v331_v41 }
 0x3b9   :  { %v337_v43 = vrot.slane %v336_v42, 2 }
 0x3bb   :  { %v338_v45 = vadd.f32 %v337_v43, %v336_v42 }
 0x3bd   :  { %v339_v26 = vrot.slane %v338_v45, 1 }
 0x3bf   :  { %v340_v46 = vadd.f32 %v339_v26, %v338_v45 }
 0x3c1   :  { %v343_v47 = vsel %vm280_vm1, %v340_v46, %v333_v9 }
 0x3c2   :  { %345 = vst [vmem:[#allocation11] sm:$0x3] %v343_v47 }
 0x3c3   :  { %650 = shalt.err (!%p647_p10)
}
 0x3c4   :  { %s651_s14 = scalar_lea.hbm %s838_s5, 32 }
 0x3c5   :  { %p652_p11 = scmp.ne.s32.totalorder %s838_s5, %s651_s14  ;;  %p655_p12 = scmp.lt.u32.totalorder %s651_s14, %s838_s5 }
 0x3c7   :  { %p657_p13 = pnand %p655_p12, %p652_p11 }
 0x3c9   :  { %660 = shalt.err (!%p657_p13)
}
 0x3ca   :  { %355 = dma.vmem_to_hbm [thread:$0]  %s353_s18, 32, %s838_s5, [#allocation4]  }
 0x3cb   :  { %667 = dma.done.wait [#allocation4], 32  }
 0x3cc   :  { %668 = vsyncadd [#allocation4], 4294967264 }
 0x3cd   :  { %669 = dma.done.wait [#allocation13], 32  }
 0x3ce   :  { %670 = vsyncadd [#allocation13], 4294967264 }
 0x3cf   :  { %372 = vsyncpa [#allocation3], 1 }
 0x3d0   :  { %373 = vsyncpa [#allocation6], 1 }
 0x3d1   :  { %374 = vsyncpa [#allocation9], 1 }
 0x3d2   :  { %375 = vsyncpa [#allocation4], 1 }
 0x3d3   :  { %376 = vsyncpa [#allocation13], 1 }

</bundles_post_ra>
